<compile_context>
chip_gen: v5e
topology: v5e:2x2
jax: 0.10.0
libtpu: 0.0.40
codegen_flags: <defaults>
</compile_context>

<pallas_src>
import functools

import jax
import jax.numpy as jnp
from jax.experimental import pallas as pl
from jax.experimental.pallas import tpu as pltpu

LANE_W = 512     # lane-dense slab width (multiple of 128)
BLOCK_R = 1024   # rows per block -> (1024, 512) f32 = 2 MiB per input block
N_CORES = 2      # max leading "parallel" split (both TCs on v7x; loop on v5e/v6e)


def _dice_num_kernel(x_ref, t_ref, o_prod_ref, o_sum_ref,
                     acc_prod_ref, acc_sum_ref,
                     *, block_r, steps, rows_valid, needs_mask):
    """Per-core streaming reduction.

    acc_prod_ref / acc_sum_ref : VMEM (block_r, LANE_W) f32 vector accumulators
                                 (persist across the sequential axis, per core).
    o_prod_ref / o_sum_ref     : (1, 8, 128) output blocks holding this core's
                                 reduced partial sums (splatted scalar).
    """
    c = pl.program_id(0)   # core / outer split (parallel)
    s = pl.program_id(1)   # sequential reduction step (arbitrary)

    @pl.when(s == 0)
    def _():
        acc_prod_ref[...] = jnp.zeros_like(acc_prod_ref)
        acc_sum_ref[...] = jnp.zeros_like(acc_sum_ref)

    # Cast to f32 on the VPU (inputs keep their native dtype in HBM).
    x = x_ref[...].astype(jnp.float32)
    t = t_ref[...].astype(jnp.float32)

    if needs_mask:
        # Mask rows beyond the valid range (partial / duplicated last blocks).
        row0 = (c * steps + s) * block_r  # unclamped global row offset
        row_ids = row0 + jax.lax.broadcasted_iota(jnp.int32, x.shape, 0)
        valid = row_ids < rows_valid
        x = jnp.where(valid, x, 0.0)
        t = jnp.where(valid, t, 0.0)

    # Pure VPU elementwise accumulation — no per-step cross-lane reductions.
    acc_prod_ref[...] += x * t
    acc_sum_ref[...] += x + t

    @pl.when(s == pl.num_programs(1) - 1)
    def _():
        inter = jnp.sum(acc_prod_ref[...])   # single end-of-grid XLU reduce
        denom = jnp.sum(acc_sum_ref[...])
        o_prod_ref[...] = jnp.full(o_prod_ref.shape, inter, dtype=jnp.float32)
        o_sum_ref[...] = jnp.full(o_sum_ref.shape, denom, dtype=jnp.float32)


@functools.partial(jax.jit, static_argnames=("block_rows", "lane_w"))
def dice_num(inp, tgt, *, block_rows=BLOCK_R, lane_w=LANE_W):
    """Pallas implementation of Dice_num.forward(input, target) -> scalar."""
    smooth = jnp.float32(1.0)

    x = inp.reshape(-1)
    t = tgt.reshape(-1)
    total = x.shape[0]
    if total == 0:
        # Empty input: (2*0 + 1) / (0 + 0 + 1) = 1.  Grid would never run.
        return smooth / smooth

    # Lane-aligned prefix goes through the kernel; the tiny ragged tail
    # (< lane_w elements) is summed in plain JAX — no full-array pad copy.
    aligned = (total // lane_w) * lane_w
    intersection = jnp.float32(0.0)
    denom = jnp.float32(0.0)

    if aligned < total:
        xr = x[aligned:].astype(jnp.float32)
        tr = t[aligned:].astype(jnp.float32)
        intersection = intersection + jnp.sum(xr * tr)
        denom = denom + jnp.sum(xr + tr)

    rows = aligned // lane_w
    if rows > 0:
        x2 = x[:aligned].reshape(rows, lane_w)
        t2 = t[:aligned].reshape(rows, lane_w)

        # Block rows: full array if small, else a multiple-of-8 large block.
        block_r = rows if rows <= block_rows else block_rows
        nblocks = pl.cdiv(rows, block_r)
        n_cores = min(N_CORES, nblocks)       # skip the split for tiny inputs
        steps = pl.cdiv(nblocks, n_cores)
        needs_mask = (n_cores * steps * block_r) != rows

        if needs_mask:
            # Clamp wholly-out-of-range block indices (their contribution is
            # masked to zero in the kernel) so the DMA never goes OOB.
            def in_index(c, s):
                return (jnp.minimum(c * steps + s, nblocks - 1), 0)
        else:
            def in_index(c, s):
                return (c * steps + s, 0)

        kernel = functools.partial(
            _dice_num_kernel,
            block_r=block_r, steps=steps, rows_valid=rows,
            needs_mask=needs_mask)

        out_shape = (
            jax.ShapeDtypeStruct((n_cores, 8, 128), jnp.float32),  # partial sum(x*t)
            jax.ShapeDtypeStruct((n_cores, 8, 128), jnp.float32),  # partial sum(x+t)
        )

        prod_part, sum_part = pl.pallas_call(
            kernel,
            out_shape=out_shape,
            grid=(n_cores, steps),
            in_specs=[
                pl.BlockSpec((block_r, lane_w), in_index),
                pl.BlockSpec((block_r, lane_w), in_index),
            ],
            out_specs=(
                pl.BlockSpec((1, 8, 128), lambda c, s: (c, 0, 0)),
                pl.BlockSpec((1, 8, 128), lambda c, s: (c, 0, 0)),
            ),
            scratch_shapes=[
                pltpu.VMEM((block_r, lane_w), jnp.float32),
                pltpu.VMEM((block_r, lane_w), jnp.float32),
            ],
            compiler_params=pltpu.CompilerParams(
                dimension_semantics=("parallel", "arbitrary"),
                vmem_limit_bytes=32 * 1024 * 1024,
            ),
        )(x2, t2)

        intersection = intersection + jnp.sum(prod_part[:, 0, 0])
        denom = denom + jnp.sum(sum_part[:, 0, 0])

    return (2.0 * intersection + smooth) / (denom + smooth)


def dice_num_ref(inp, tgt):
    """Pure-JAX reference matching the PyTorch semantics."""
    n = tgt.shape[0]
    smooth = 1.0
    i_flat = inp.reshape(n, -1).astype(jnp.float32)
    t_flat = tgt.reshape(n, -1).astype(jnp.float32)
    intersection = jnp.sum(i_flat * t_flat)
    return (2.0 * intersection + smooth) / (jnp.sum(i_flat) + jnp.sum(t_flat) + smooth)


if __name__ == "__main__":
    key = jax.random.PRNGKey(0)
    k1, k2, k3, k4, k5, k6, k7, k8 = jax.random.split(key, 8)

    # Primary spec-sized case: NCHW batch=2, channels=4, spatial 16x16.
    inp = jax.random.uniform(k1, (2, 4, 16, 16), dtype=jnp.float32)
    tgt = (jax.random.uniform(k2, (2, 4, 16, 16)) > 0.5).astype(jnp.float32)
    dice = dice_num(inp, tgt)
    jax.block_until_ready(dice)
    ref = dice_num_ref(inp, tgt)
    assert jnp.allclose(dice, ref, rtol=1e-5, atol=1e-6), (dice, ref)

    # Larger multi-block case with bf16 input (in-kernel cast + 2-core split).
    inp2 = jax.random.uniform(k3, (4, 4, 256, 256), dtype=jnp.float32).astype(jnp.bfloat16)
    tgt2 = (jax.random.uniform(k4, (4, 4, 256, 256)) > 0.5).astype(jnp.float32)
    dice2 = dice_num(inp2, tgt2)
    jax.block_until_ready(dice2)
    ref2 = dice_num_ref(inp2, tgt2)
    assert jnp.allclose(dice2, ref2, rtol=1e-4, atol=1e-5), (dice2, ref2)

    # Ragged total (not a multiple of the lane width) -> JAX tail path.
    inp3 = jax.random.uniform(k5, (2, 3, 17, 19), dtype=jnp.float32)
    tgt3 = (jax.random.uniform(k6, (2, 3, 17, 19)) > 0.5).astype(jnp.float32)
    dice3 = dice_num(inp3, tgt3)
    jax.block_until_ready(dice3)
    ref3 = dice_num_ref(inp3, tgt3)
    assert jnp.allclose(dice3, ref3, rtol=1e-5, atol=1e-6), (dice3, ref3)

    # Row-mask path: rows (300) not a multiple of the block split (128 x 2 cores).
    inp4 = jax.random.uniform(k7, (2, 2, 75, 512), dtype=jnp.float32)
    tgt4 = (jax.random.uniform(k8, (2, 2, 75, 512)) > 0.5).astype(jnp.float32)
    dice4 = dice_num(inp4, tgt4, block_rows=128)
    jax.block_until_ready(dice4)
    ref4 = dice_num_ref(inp4, tgt4)
    assert jnp.allclose(dice4, ref4, rtol=1e-5, atol=1e-6), (dice4, ref4)

    print("KERNEL_OK")
</pallas_src>

<mosaic_0001>
module attributes {stable_mosaic.version = 11 : i64} {
  func.func @_dice_num_kernel(%arg0: i32, %arg1: i32, %arg2: memref<4x512xf32, #tpu.memory_space<vmem>>, %arg3: memref<4x512xf32, #tpu.memory_space<vmem>>, %arg4: memref<1x8x128xf32, #tpu.memory_space<vmem>>, %arg5: memref<1x8x128xf32, #tpu.memory_space<vmem>>, %arg6: memref<4x512xf32, #tpu.memory_space<vmem>>, %arg7: memref<4x512xf32, #tpu.memory_space<vmem>>) attributes {dimension_semantics = [#tpu.dimension_semantics<parallel>, #tpu.dimension_semantics<arbitrary>], iteration_bounds = array<i64: 1, 1>, scalar_prefetch = 0 : i64, scratch_operands = 2 : i64, tpu.core_type = #tpu.core_type<tc>, window_params = [{transform_indices = @transform_0, window_bounds = array<i64: 4, 512>}, {transform_indices = @transform_1, window_bounds = array<i64: 4, 512>}, {transform_indices = @transform_2, window_bounds = array<i64: 1, 8, 128>}, {transform_indices = @transform_3, window_bounds = array<i64: 1, 8, 128>}]} {
    %c0_i32 = arith.constant 0 : i32
    %0 = arith.cmpi eq, %arg1, %c0_i32 : i32
    %1 = arith.extui %0 : i1 to i32
    %c0_i32_0 = arith.constant 0 : i32
    %2 = arith.cmpi ne, %1, %c0_i32_0 : i32
    scf.if %2 {
      %cst = arith.constant 0.000000e+00 : f32
      %16 = vector.broadcast %cst : f32 to vector<4x512xf32>
      %c0_14 = arith.constant 0 : index
      %c0_15 = arith.constant 0 : index
      %17 = vector.load %arg6[%c0_14, %c0_15] : memref<4x512xf32, #tpu.memory_space<vmem>>, vector<4x512xf32>
      tpu.vector_store %arg6[%c0_14, %c0_15], %16 {strides = array<i32>} : memref<4x512xf32, #tpu.memory_space<vmem>>, vector<4x512xf32>,
      %cst_16 = arith.constant 0.000000e+00 : f32
      %18 = vector.broadcast %cst_16 : f32 to vector<4x512xf32>
      %c0_17 = arith.constant 0 : index
      %c0_18 = arith.constant 0 : index
      %19 = vector.load %arg7[%c0_17, %c0_18] : memref<4x512xf32, #tpu.memory_space<vmem>>, vector<4x512xf32>
      tpu.vector_store %arg7[%c0_17, %c0_18], %18 {strides = array<i32>} : memref<4x512xf32, #tpu.memory_space<vmem>>, vector<4x512xf32>,
    } else {
    }
    %c0 = arith.constant 0 : index
    %c0_1 = arith.constant 0 : index
    %3 = vector.load %arg2[%c0, %c0_1] : memref<4x512xf32, #tpu.memory_space<vmem>>, vector<4x512xf32>
    %c0_2 = arith.constant 0 : index
    %c0_3 = arith.constant 0 : index
    %4 = vector.load %arg3[%c0_2, %c0_3] : memref<4x512xf32, #tpu.memory_space<vmem>>, vector<4x512xf32>
    %c0_4 = arith.constant 0 : index
    %c0_5 = arith.constant 0 : index
    %5 = vector.load %arg6[%c0_4, %c0_5] : memref<4x512xf32, #tpu.memory_space<vmem>>, vector<4x512xf32>
    %6 = arith.mulf %3, %4 : vector<4x512xf32>
    %7 = arith.addf %5, %6 : vector<4x512xf32>
    %c0_6 = arith.constant 0 : index
    %c0_7 = arith.constant 0 : index
    %8 = vector.load %arg6[%c0_6, %c0_7] : memref<4x512xf32, #tpu.memory_space<vmem>>, vector<4x512xf32>
    tpu.vector_store %arg6[%c0_6, %c0_7], %7 {strides = array<i32>} : memref<4x512xf32, #tpu.memory_space<vmem>>, vector<4x512xf32>,
    %c0_8 = arith.constant 0 : index
    %c0_9 = arith.constant 0 : index
    %9 = vector.load %arg7[%c0_8, %c0_9] : memref<4x512xf32, #tpu.memory_space<vmem>>, vector<4x512xf32>
    %10 = arith.addf %3, %4 : vector<4x512xf32>
    %11 = arith.addf %9, %10 : vector<4x512xf32>
    %c0_10 = arith.constant 0 : index
    %c0_11 = arith.constant 0 : index
    %12 = vector.load %arg7[%c0_10, %c0_11] : memref<4x512xf32, #tpu.memory_space<vmem>>, vector<4x512xf32>
    tpu.vector_store %arg7[%c0_10, %c0_11], %11 {strides = array<i32>} : memref<4x512xf32, #tpu.memory_space<vmem>>, vector<4x512xf32>,
    %c0_i32_12 = arith.constant 0 : i32
    %13 = arith.cmpi eq, %arg1, %c0_i32_12 : i32
    %14 = arith.extui %13 : i1 to i32
    %c0_i32_13 = arith.constant 0 : i32
    %15 = arith.cmpi ne, %14, %c0_i32_13 : i32
    scf.if %15 {
      %c0_14 = arith.constant 0 : index
      %c0_15 = arith.constant 0 : index
      %16 = vector.load %arg6[%c0_14, %c0_15] : memref<4x512xf32, #tpu.memory_space<vmem>>, vector<4x512xf32>
      %17 = vector.shape_cast %16 : vector<4x512xf32> to vector<1x4x512xf32>
      %cst = arith.constant dense<0.000000e+00> : vector<1xf32>
      %18 = vector.multi_reduction <add>, %17, %cst [1, 2] : vector<1x4x512xf32> to vector<1xf32>
      %19 = vector.shape_cast %18 : vector<1xf32> to vector<1x1x1xf32>
      %20 = vector.extract %19[0, 0, 0] : f32 from vector<1x1x1xf32>
      %c0_16 = arith.constant 0 : index
      %c0_17 = arith.constant 0 : index
      %21 = vector.load %arg7[%c0_16, %c0_17] : memref<4x512xf32, #tpu.memory_space<vmem>>, vector<4x512xf32>
      %22 = vector.shape_cast %21 : vector<4x512xf32> to vector<1x4x512xf32>
      %cst_18 = arith.constant dense<0.000000e+00> : vector<1xf32>
      %23 = vector.multi_reduction <add>, %22, %cst_18 [1, 2] : vector<1x4x512xf32> to vector<1xf32>
      %24 = vector.shape_cast %23 : vector<1xf32> to vector<1x1x1xf32>
      %25 = vector.extract %24[0, 0, 0] : f32 from vector<1x1x1xf32>
      %26 = vector.broadcast %20 : f32 to vector<1x8x128xf32>
      %c0_19 = arith.constant 0 : index
      %c0_20 = arith.constant 0 : index
      %c0_21 = arith.constant 0 : index
      %27 = vector.load %arg4[%c0_19, %c0_20, %c0_21] : memref<1x8x128xf32, #tpu.memory_space<vmem>>, vector<1x8x128xf32>
      tpu.vector_store %arg4[%c0_19, %c0_20, %c0_21], %26 {strides = array<i32>} : memref<1x8x128xf32, #tpu.memory_space<vmem>>, vector<1x8x128xf32>,
      %28 = vector.broadcast %25 : f32 to vector<1x8x128xf32>
      %c0_22 = arith.constant 0 : index
      %c0_23 = arith.constant 0 : index
      %c0_24 = arith.constant 0 : index
      %29 = vector.load %arg5[%c0_22, %c0_23, %c0_24] : memref<1x8x128xf32, #tpu.memory_space<vmem>>, vector<1x8x128xf32>
      tpu.vector_store %arg5[%c0_22, %c0_23, %c0_24], %28 {strides = array<i32>} : memref<1x8x128xf32, #tpu.memory_space<vmem>>, vector<1x8x128xf32>,
    } else {
    }
    return
  }
  func.func @transform_0(%arg0: i32, %arg1: i32) -> (i32, i32) {
    %c1_i32 = arith.constant 1 : i32
    %0 = arith.muli %arg0, %c1_i32 : i32
    %1 = arith.addi %0, %arg1 : i32
    %c0_i32 = arith.constant 0 : i32
    %c0_i32_0 = arith.constant 0 : i32
    return %1, %c0_i32 : i32, i32
  }
  func.func @transform_1(%arg0: i32, %arg1: i32) -> (i32, i32) {
    %c1_i32 = arith.constant 1 : i32
    %0 = arith.muli %arg0, %c1_i32 : i32
    %1 = arith.addi %0, %arg1 : i32
    %c0_i32 = arith.constant 0 : i32
    %c0_i32_0 = arith.constant 0 : i32
    return %1, %c0_i32 : i32, i32
  }
  func.func @transform_2(%arg0: i32, %arg1: i32) -> (i32, i32, i32) {
    %c0_i32 = arith.constant 0 : i32
    %c0_i32_0 = arith.constant 0 : i32
    %c0_i32_1 = arith.constant 0 : i32
    return %arg0, %c0_i32, %c0_i32_0 : i32, i32, i32
  }
  func.func @transform_3(%arg0: i32, %arg1: i32) -> (i32, i32, i32) {
    %c0_i32 = arith.constant 0 : i32
    %c0_i32_0 = arith.constant 0 : i32
    %c0_i32_1 = arith.constant 0 : i32
    return %arg0, %c0_i32, %c0_i32_0 : i32, i32, i32
  }
}

</mosaic_0001>

<bundles_post_ra>
// kernel: dice_num.1
= control target key start
LH: loop header
LB: loop body
LE: loop exit
PB: predicated region body
PF: predicated region fallthrough
CT: control target
= control target key end

     0   :  { %vm99_vm0 = vcmask 1043456   ;;  %s221_s0 = inlined_call_operand.vmem [shape: f32[4,512], index: 0, kind: input, shape index: {}]   ;;  %s222_s1 = inlined_call_operand.vmem [shape: f32[4,512], index: 1, kind: input, shape index: {}]   ;;  %s223_s2 = inlined_call_operand.vmem [shape: f32[1,8,128], index: 2, kind: output, shape index: {0}]   ;;  %s224_s3 = inlined_call_operand.vmem [shape: f32[1,8,128], index: 3, kind: output, shape index: {1}]  }
   0x1   :  { %v61_v0 = vld [vmem:[%s221_s0] sm:$0xff]  ;;  %v62_v1 = vld [vmem:[%s221_s0 + $0x8] sm:$0xff] }
   0x2   :  { %v63_v2 = vld [vmem:[%s222_s1] sm:$0xff]  ;;  %v64_v3 = vld [vmem:[%s222_s1 + $0x8] sm:$0xff] }
   0x3   :  { %v67_v4 = vmul.f32 %v63_v2, %v61_v0  ;;  %v68_v5 = vmul.f32 %v64_v3, %v62_v1  ;;  %v75_v6 = vadd.f32 %v63_v2, %v61_v0  ;;  %v76_v7 = vadd.f32 %v64_v3, %v62_v1 }
   0x5   :  { %88 = vst [vmem:[#allocation1] ss:$2 sm:$0xff] %v67_v4 }
   0x6   :  { %90 = vst [vmem:[#allocation1 + $0x10] ss:$2 sm:$0xff] %v68_v5 }
   0xc   :  { %v91_v8 = vld.sshfl [vmem:[#allocation1] sm:$0xff pattern:$0x75316420]  ;;  %v92_v9 = vld.sshfl [vmem:[#allocation1 + $0x8] sm:$0xff pattern:$0x75316420] }
   0xd   :  { %v93_v10 = vld.sshfl [vmem:[#allocation1 + $0x10] sm:$0xff pattern:$0x75316420]  ;;  %v94_v11 = vld.sshfl [vmem:[#allocation1 + $0x18] sm:$0xff pattern:$0x75316420] }
   0xe   :  { %v100_v12 = vsel %vm99_vm0, %v91_v8, 0.0  ;;  %v101_v13 = vsel %vm99_vm0, %v92_v9, 0.0  ;;  %v103_v14 = vsel %vm99_vm0, %v93_v10, 0.0  ;;  %120 = vst [vmem:[#allocation1] ss:$2 sm:$0xff] %v75_v6  ;;  %v105_v16 = vsel %vm99_vm0, %v94_v11, 0.0 }
   0xf   :  { %v102_v15 = vadd.f32 %v101_v13, %v100_v12  ;;  %122 = vst [vmem:[#allocation1 + $0x10] ss:$2 sm:$0xff] %v76_v7 }
  0x11   :  { %v104_v17 = vadd.f32 %v103_v14, %v102_v15 }
  0x13   :  { %v106_v18 = vadd.f32 %v105_v16, %v104_v17 }
  0x15   :  { %107 = vadd.xlane.f32.xlu0 %v106_v18  ;;  %v123_v19 = vld.sshfl [vmem:[#allocation1] sm:$0xff pattern:$0x75316420]  ;;  %v124_v20 = vld.sshfl [vmem:[#allocation1 + $0x8] sm:$0xff pattern:$0x75316420] }
  0x16   :  { %v125_v21 = vld.sshfl [vmem:[#allocation1 + $0x10] sm:$0xff pattern:$0x75316420]  ;;  %v126_v22 = vld.sshfl [vmem:[#allocation1 + $0x18] sm:$0xff pattern:$0x75316420] }
  0x17   :  { %v131_v23 = vsel %vm99_vm0, %v123_v19, 0.0  ;;  %v132_v24 = vsel %vm99_vm0, %v124_v20, 0.0  ;;  %v134_v25 = vsel %vm99_vm0, %v125_v21, 0.0  ;;  %v136_v27 = vsel %vm99_vm0, %v126_v22, 0.0 }
  0x18   :  { %v133_v26 = vadd.f32 %v132_v24, %v131_v23 }
  0x1a   :  { %v135_v28 = vadd.f32 %v134_v25, %v133_v26 }
  0x1c   :  { %v137_v29 = vadd.f32 %v136_v27, %v135_v28 }
  0x1e   :  { %138 = vadd.xlane.f32.xlu0 %v137_v29 }
  0x88   :  { %v108_v30 = vpop.xlane.xlu0 %107 }
  0x89   :  { %v109_v31 = vrot.slane %v108_v30, 4 }
  0x8b   :  { %v110_v32 = vadd.f32 %v109_v31, %v108_v30 }
  0x8d   :  { %v111_v33 = vrot.slane %v110_v32, 2 }
  0x8f   :  { %v112_v34 = vadd.f32 %v111_v33, %v110_v32 }
  0x91   :  { %v139_v35 = vpop.xlane.xlu0 %138  ;;  %v113_v36 = vrot.slane %v112_v34, 1 }
  0x92   :  { %v140_v37 = vrot.slane %v139_v35, 4 }
  0x93   :  { %v114_v38 = vadd.f32 %v113_v36, %v112_v34 }
  0x94   :  { %v141_v39 = vadd.f32 %v140_v37, %v139_v35 }
  0x95   :  { %171 = vpush %v114_v38 }
  0x96   :  { %v142_v40 = vrot.slane %v141_v39, 2 }
  0x98   :  { %v143_v41 = vadd.f32 %v142_v40, %v141_v39 }
  0x9a   :  { %v144_v42 = vrot.slane %v143_v41, 1 }
  0x9c   :  { %v145_v43 = vadd.f32 %v144_v42, %v143_v41 }
  0x9e   :  { %173 = vpush %v145_v43 }
  0xc6   :  { %s172_s0 = spop %171 }
  0xc7   :  { %v147_v44 = vstv %s172_s0 }
  0xc8   :  { %148 = vst [vmem:[%s223_s2] sm:$0xff] %v147_v44 }
  0xcf   :  { %s174_s21 = spop %173 }
  0xd0   :  { %v149_v45 = vstv %s174_s21 }
  0xd1   :  { %150 = vst [vmem:[%s224_s3] sm:$0xff] %v149_v45 }

</bundles_post_ra>
